<compile_context>
chip_gen: v5e
topology: v5e:2x2
jax: 0.10.0
libtpu: 0.0.40
codegen_flags: <defaults>
</compile_context>

<pallas_src>
import jax
import jax.numpy as jnp
from jax.experimental import pallas as pl
from jax.experimental.pallas import tpu as pltpu


def _round_up(x, m):
    return ((x + m - 1) // m) * m


def _make_kernel(S, ts, tn, mask_rows):
    """Builds the kernel with static tiling parameters closed over."""
    ngroups = ts // 8  # ts is always a multiple of 8

    def kernel(logw_ref, cost_ref, nf_ref, out_ref, m_sc, l_sc):
        # logw_ref: (ts, tn) VMEM (caller dtype)   cost_ref: (1, tn) VMEM
        # nf_ref:   (1, 1) f32 SMEM                out_ref:  (1, tn) f32 VMEM
        # m_sc/l_sc: (8, tn) f32 VMEM scratch (per-sublane running max / sum)
        s = pl.program_id(1)
        num_s = pl.num_programs(1)

        @pl.when(s == 0)
        def _():
            m_sc[...] = jnp.full_like(m_sc, -jnp.inf)
            l_sc[...] = jnp.zeros_like(l_sc)

        # Cast after the DMA (VPU), mask rows beyond the true S to -inf so
        # partial boundary blocks on the reduction axis contribute nothing.
        logw = logw_ref[...].astype(jnp.float32)                  # (ts, tn)
        if mask_rows:  # static
            row = jax.lax.broadcasted_iota(jnp.int32, (ts, tn), 0)
            logw = jnp.where(row + s * ts < S, logw, -jnp.inf)

        # Per-sublane-row tile max over groups of 8 rows: pure VPU elementwise
        # maxes of (8, tn) slabs, no cross-sublane XLU reduce in the hot loop.
        m_t = logw[0:8, :]
        for g in range(1, ngroups):
            m_t = jnp.maximum(m_t, logw[g * 8:(g + 1) * 8, :])

        m_old = m_sc[...]                                         # (8, tn)
        m_new = jnp.maximum(m_old, m_t)
        m_new_safe = jnp.where(jnp.isneginf(m_new), 0.0, m_new)
        # -inf-safe rescale: exp(-inf - finite) == 0 (and l_old == 0 there),
        # so no 0 * inf = NaN even when the tile max is finite but << -88.
        alpha = jnp.exp(m_old - m_new_safe)

        p_sum = jnp.exp(logw[0:8, :] - m_new_safe)
        for g in range(1, ngroups):
            p_sum = p_sum + jnp.exp(logw[g * 8:(g + 1) * 8, :] - m_new_safe)

        l_sc[...] = l_sc[...] * alpha + p_sum
        m_sc[...] = m_new

        @pl.when(s == num_s - 1)
        def _():
            m = m_sc[...]                                         # (8, tn)
            l = l_sc[...]
            # Single cross-sublane reduce, once per lane tile.
            M = jnp.max(m, axis=0, keepdims=True)                 # (1, tn)
            M_safe = jnp.where(jnp.isneginf(M), 0.0, M)
            L = jnp.sum(l * jnp.exp(m - M_safe), axis=0, keepdims=True)
            lse = M_safe + jnp.log(L)          # all -inf column -> -inf (L=0)
            loss = cost_ref[...].astype(jnp.float32) + lse
            loss = jnp.where(jnp.isnan(loss), 0.0, loss)
            inv_nf = 1.0 / nf_ref[0, 0]                           # hoisted
            out_ref[...] = loss * inv_nf                          # single store

    return kernel


def monte_carlo_pose_loss_forward(pose_sample_logweights, cost_target,
                                  norm_factor_buf, *, tn_max=2048, ts_max=256):
    """Pallas forward: returns loss_pose of shape (num_obj,), float32."""
    S, N = pose_sample_logweights.shape
    LANE = 128

    # dtype-aware sublane tile (8 for f32, 16 for bf16, 32 for 8-bit types)
    itemsize = jnp.dtype(pose_sample_logweights.dtype).itemsize
    SUB = max(8, 32 // max(itemsize, 1))

    # Lane axis: no padding anywhere.
    if N < LANE:
        # Full minor dim: contiguous DMA of real bytes only (typical small
        # num_obj).  Lane density is lower but the op stays HBM-bound.
        tn = N
    else:
        # Lane-dense 128-multiple tiles; cap at ~N/2 so the "parallel" grid
        # axis has >= 2 blocks whenever possible (keeps both v7x TCs busy).
        tn_cap = _round_up(max(-(-N // 2), LANE), LANE)
        tn = min(_round_up(tn_max, LANE), tn_cap)
    n_tiles = pl.cdiv(N, tn)

    # Reduction (mc_samples) axis: partial last tile handled by in-kernel mask.
    ts = min(_round_up(ts_max, SUB), _round_up(S, SUB))
    s_tiles = pl.cdiv(S, ts)
    mask_rows = (S % ts) != 0

    cost2 = cost_target.reshape(1, N)
    nf = jnp.asarray(norm_factor_buf, jnp.float32).reshape(1, 1)

    kernel = _make_kernel(S, ts, tn, mask_rows)

    cost_est = pl.CostEstimate(
        flops=6 * S * N,
        transcendentals=S * N + N,                 # exp per element + final log
        bytes_accessed=S * N * itemsize + 2 * 4 * N + 4,
    )

    out = pl.pallas_call(
        kernel,
        out_shape=jax.ShapeDtypeStruct((1, N), jnp.float32),
        grid_spec=pltpu.PrefetchScalarGridSpec(
            num_scalar_prefetch=0,
            grid=(n_tiles, s_tiles),               # reduction axis last
            in_specs=[
                pl.BlockSpec((ts, tn), lambda j, s: (s, j)),
                pl.BlockSpec((1, tn), lambda j, s: (0, j)),
                pl.BlockSpec(memory_space=pltpu.MemorySpace.SMEM),
            ],
            out_specs=pl.BlockSpec((1, tn), lambda j, s: (0, j)),
            scratch_shapes=[
                pltpu.VMEM((8, tn), jnp.float32),   # per-sublane running max
                pltpu.VMEM((8, tn), jnp.float32),   # per-sublane running sum
            ],
        ),
        compiler_params=pltpu.CompilerParams(
            # num_obj tiles independent (megacore-shardable); S is a reduction.
            dimension_semantics=("parallel", "arbitrary"),
            # ts_max=256, tn_max=2048 f32 block = 2 MiB, double-buffered + f32
            # temporaries stays far below 32 MiB -> safe on v7x's 64 MiB VMEM.
            vmem_limit_bytes=32 * 1024 * 1024,
        ),
        cost_estimate=cost_est,
    )(pose_sample_logweights, cost2, nf)
    return out[0]


class MonteCarloPoseLoss:
    """Thin stateful wrapper mirroring the PyTorch module (training=True)."""

    def __init__(self, init_norm_factor=1.0, momentum=0.01):
        self.norm_factor = jnp.asarray(init_norm_factor, jnp.float32)
        self.momentum = momentum
        self.training = True

    def __call__(self, pose_sample_logweights, cost_target, norm_factor):
        if self.training:
            # TODO(synk): PyTorch's in-place register_buffer EMA (no-grad) has
            # no Pallas equivalent; kept as host-side scalar state in plain JAX.
            self.norm_factor = (
                self.norm_factor * (1.0 - self.momentum)
                + self.momentum * jnp.asarray(norm_factor, jnp.float32)
            )
        return monte_carlo_pose_loss_forward(
            pose_sample_logweights, cost_target, self.norm_factor
        )


def _reference(pose_sample_logweights, cost_target, norm_factor_buf):
    lse = jax.scipy.special.logsumexp(pose_sample_logweights, axis=0)
    loss = cost_target + lse
    loss = jnp.where(jnp.isnan(loss), 0.0, loss)
    return loss / norm_factor_buf


if __name__ == "__main__":
    key = jax.random.PRNGKey(0)
    mc_samples, num_obj = 8, 16
    k1, k2, k3, k4, k5, k6, k7 = jax.random.split(key, 7)

    # --- Test 1: module-shaped case (small N < 128, f32, single tiles) ---
    pose_sample_logweights = jax.random.normal(k1, (mc_samples, num_obj), jnp.float32)
    cost_target = jax.random.normal(k2, (num_obj,), jnp.float32) ** 2
    norm_factor = jnp.abs(jax.random.normal(k3, ())) + 0.5

    module = MonteCarloPoseLoss(init_norm_factor=1.0, momentum=0.01)
    loss = jax.block_until_ready(module(pose_sample_logweights, cost_target, norm_factor))
    ref = _reference(pose_sample_logweights, cost_target, module.norm_factor)
    assert loss.shape == (num_obj,)
    assert jnp.allclose(loss, ref, atol=1e-5, rtol=1e-5), (loss, ref)

    # --- Test 2: bf16 input, non-aligned shapes: partial lane block (N=200,
    # tn=128 -> 2 lane tiles), partial + multi-step S tiles with in-kernel
    # row masking (S=27, ts=16), in-kernel cast, (8,tn) accumulators. ---
    S2, N2 = 27, 200
    logw2 = jax.random.normal(k4, (S2, N2), jnp.float32).astype(jnp.bfloat16)
    cost2 = jax.random.normal(k5, (N2,), jnp.float32) ** 2
    out2 = jax.block_until_ready(
        monte_carlo_pose_loss_forward(logw2, cost2, module.norm_factor,
                                      tn_max=128, ts_max=16))
    ref2 = _reference(logw2.astype(jnp.float32), cost2, module.norm_factor)
    assert out2.shape == (N2,)
    assert jnp.allclose(out2, ref2, atol=1e-4, rtol=1e-4), (out2, ref2)

    # --- Test 3: streaming-logsumexp edge cases that used to NaN-poison the
    # old -inf guard: a finite-but-exp-underflow column and an all -inf column,
    # across multiple reduction steps with a masked remainder tile. ---
    S3, N3 = 20, 16
    logw3 = jax.random.normal(k6, (S3, N3), jnp.float32)
    logw3 = logw3.at[:, 3].set(-745.0)
    logw3 = logw3.at[:, 7].set(-jnp.inf)
    cost3 = jnp.abs(jax.random.normal(k7, (N3,)))
    out3 = jax.block_until_ready(
        monte_carlo_pose_loss_forward(logw3, cost3, module.norm_factor, ts_max=8))
    ref3 = _reference(logw3, cost3, module.norm_factor)
    assert out3.shape == (N3,)
    assert jnp.allclose(out3, ref3, atol=1e-4, rtol=1e-4), (out3, ref3)

    print("KERNEL_OK")
</pallas_src>

<mosaic_0001>
module attributes {stable_mosaic.version = 11 : i64} {
  func.func @kernel(%arg0: i32, %arg1: i32, %arg2: memref<8x16xf32, #tpu.memory_space<vmem>>, %arg3: memref<1x16xf32, #tpu.memory_space<vmem>>, %arg4: memref<1x1xf32, #tpu.memory_space<smem>>, %arg5: memref<1x16xf32, #tpu.memory_space<vmem>>, %arg6: memref<8x16xf32, #tpu.memory_space<vmem>>, %arg7: memref<8x16xf32, #tpu.memory_space<vmem>>) attributes {dimension_semantics = [#tpu.dimension_semantics<parallel>, #tpu.dimension_semantics<arbitrary>], iteration_bounds = array<i64: 1, 1>, scalar_prefetch = 0 : i64, scratch_operands = 2 : i64, tpu.core_type = #tpu.core_type<tc>, window_params = [{transform_indices = @transform_0, window_bounds = array<i64: 8, 16>}, {transform_indices = @transform_1, window_bounds = array<i64: 1, 16>}, {transform_indices = @transform_2, window_bounds = array<i64: 1, 1>}, {transform_indices = @transform_3, window_bounds = array<i64: 1, 16>}]} {
    %c0_i32 = arith.constant 0 : i32
    %0 = arith.cmpi eq, %arg1, %c0_i32 : i32
    %1 = arith.extui %0 : i1 to i32
    %c0_i32_0 = arith.constant 0 : i32
    %2 = arith.cmpi ne, %1, %c0_i32_0 : i32
    scf.if %2 {
      %cst_13 = arith.constant 0xFF800000 : f32
      %22 = vector.broadcast %cst_13 : f32 to vector<8x16xf32>
      %c0_14 = arith.constant 0 : index
      %c0_15 = arith.constant 0 : index
      %23 = vector.load %arg6[%c0_14, %c0_15] : memref<8x16xf32, #tpu.memory_space<vmem>>, vector<8x16xf32>
      tpu.vector_store %arg6[%c0_14, %c0_15], %22 {strides = array<i32>} : memref<8x16xf32, #tpu.memory_space<vmem>>, vector<8x16xf32>,
      %cst_16 = arith.constant 0.000000e+00 : f32
      %24 = vector.broadcast %cst_16 : f32 to vector<8x16xf32>
      %c0_17 = arith.constant 0 : index
      %c0_18 = arith.constant 0 : index
      %25 = vector.load %arg7[%c0_17, %c0_18] : memref<8x16xf32, #tpu.memory_space<vmem>>, vector<8x16xf32>
      tpu.vector_store %arg7[%c0_17, %c0_18], %24 {strides = array<i32>} : memref<8x16xf32, #tpu.memory_space<vmem>>, vector<8x16xf32>,
    } else {
    }
    %c0 = arith.constant 0 : index
    %c0_1 = arith.constant 0 : index
    %3 = vector.load %arg2[%c0, %c0_1] : memref<8x16xf32, #tpu.memory_space<vmem>>, vector<8x16xf32>
    %c0_2 = arith.constant 0 : index
    %c0_3 = arith.constant 0 : index
    %4 = vector.load %arg6[%c0_2, %c0_3] : memref<8x16xf32, #tpu.memory_space<vmem>>, vector<8x16xf32>
    %5 = arith.maximumf %4, %3 : vector<8x16xf32>
    %cst = arith.constant 0xFF800000 : f32
    %6 = vector.broadcast %cst : f32 to vector<8x16xf32>
    %7 = arith.cmpf oeq, %5, %6 : vector<8x16xf32>
    %cst_4 = arith.constant 0.000000e+00 : f32
    %8 = vector.broadcast %cst_4 : f32 to vector<8x16xf32>
    %9 = arith.select %7, %8, %5 : vector<8x16xi1>, vector<8x16xf32>
    %10 = arith.subf %4, %9 : vector<8x16xf32>
    %11 = math.exp %10 : vector<8x16xf32>
    %12 = arith.subf %3, %9 : vector<8x16xf32>
    %13 = math.exp %12 : vector<8x16xf32>
    %c0_5 = arith.constant 0 : index
    %c0_6 = arith.constant 0 : index
    %14 = vector.load %arg7[%c0_5, %c0_6] : memref<8x16xf32, #tpu.memory_space<vmem>>, vector<8x16xf32>
    %15 = arith.mulf %14, %11 : vector<8x16xf32>
    %16 = arith.addf %15, %13 : vector<8x16xf32>
    %c0_7 = arith.constant 0 : index
    %c0_8 = arith.constant 0 : index
    %17 = vector.load %arg7[%c0_7, %c0_8] : memref<8x16xf32, #tpu.memory_space<vmem>>, vector<8x16xf32>
    tpu.vector_store %arg7[%c0_7, %c0_8], %16 {strides = array<i32>} : memref<8x16xf32, #tpu.memory_space<vmem>>, vector<8x16xf32>,
    %c0_9 = arith.constant 0 : index
    %c0_10 = arith.constant 0 : index
    %18 = vector.load %arg6[%c0_9, %c0_10] : memref<8x16xf32, #tpu.memory_space<vmem>>, vector<8x16xf32>
    tpu.vector_store %arg6[%c0_9, %c0_10], %5 {strides = array<i32>} : memref<8x16xf32, #tpu.memory_space<vmem>>, vector<8x16xf32>,
    %c0_i32_11 = arith.constant 0 : i32
    %19 = arith.cmpi eq, %arg1, %c0_i32_11 : i32
    %20 = arith.extui %19 : i1 to i32
    %c0_i32_12 = arith.constant 0 : i32
    %21 = arith.cmpi ne, %20, %c0_i32_12 : i32
    scf.if %21 {
      %c0_13 = arith.constant 0 : index
      %c0_14 = arith.constant 0 : index
      %22 = vector.load %arg6[%c0_13, %c0_14] : memref<8x16xf32, #tpu.memory_space<vmem>>, vector<8x16xf32>
      %c0_15 = arith.constant 0 : index
      %c0_16 = arith.constant 0 : index
      %23 = vector.load %arg7[%c0_15, %c0_16] : memref<8x16xf32, #tpu.memory_space<vmem>>, vector<8x16xf32>
      %cst_17 = arith.constant dense<0xFF800000> : vector<16xf32>
      %24 = vector.multi_reduction <maximumf>, %22, %cst_17 [0] : vector<8x16xf32> to vector<16xf32>
      %25 = vector.shape_cast %24 : vector<16xf32> to vector<1x16xf32>
      %cst_18 = arith.constant 0xFF800000 : f32
      %26 = vector.broadcast %cst_18 : f32 to vector<1x16xf32>
      %27 = arith.cmpf oeq, %25, %26 : vector<1x16xf32>
      %cst_19 = arith.constant 0.000000e+00 : f32
      %28 = vector.broadcast %cst_19 : f32 to vector<1x16xf32>
      %29 = arith.select %27, %28, %25 : vector<1x16xi1>, vector<1x16xf32>
      %30 = vector.broadcast %29 : vector<1x16xf32> to vector<8x16xf32>
      %31 = arith.subf %22, %30 : vector<8x16xf32>
      %32 = math.exp %31 : vector<8x16xf32>
      %33 = arith.mulf %23, %32 : vector<8x16xf32>
      %cst_20 = arith.constant dense<0.000000e+00> : vector<16xf32>
      %34 = vector.multi_reduction <add>, %33, %cst_20 [0] : vector<8x16xf32> to vector<16xf32>
      %35 = vector.shape_cast %34 : vector<16xf32> to vector<1x16xf32>
      %36 = math.log %35 : vector<1x16xf32>
      %37 = arith.addf %29, %36 : vector<1x16xf32>
      %c0_21 = arith.constant 0 : index
      %c0_22 = arith.constant 0 : index
      %38 = vector.load %arg3[%c0_21, %c0_22] : memref<1x16xf32, #tpu.memory_space<vmem>>, vector<1x16xf32>
      %39 = arith.addf %38, %37 : vector<1x16xf32>
      %40 = arith.cmpf one, %39, %39 : vector<1x16xf32>
      %cst_23 = arith.constant 0.000000e+00 : f32
      %41 = vector.broadcast %cst_23 : f32 to vector<1x16xf32>
      %42 = arith.select %40, %41, %39 : vector<1x16xi1>, vector<1x16xf32>
      %c0_24 = arith.constant 0 : index
      %c0_25 = arith.constant 0 : index
      %43 = memref.load %arg4[%c0_24, %c0_25] : memref<1x1xf32, #tpu.memory_space<smem>>
      %cst_26 = arith.constant 1.000000e+00 : f32
      %44 = arith.divf %cst_26, %43 : f32
      %45 = vector.broadcast %44 : f32 to vector<1x16xf32>
      %46 = arith.mulf %42, %45 : vector<1x16xf32>
      %c0_27 = arith.constant 0 : index
      %c0_28 = arith.constant 0 : index
      %47 = vector.load %arg5[%c0_27, %c0_28] : memref<1x16xf32, #tpu.memory_space<vmem>>, vector<1x16xf32>
      tpu.vector_store %arg5[%c0_27, %c0_28], %46 {strides = array<i32>} : memref<1x16xf32, #tpu.memory_space<vmem>>, vector<1x16xf32>,
    } else {
    }
    return
  }
  func.func @transform_0(%arg0: i32, %arg1: i32) -> (i32, i32) {
    %c0_i32 = arith.constant 0 : i32
    return %arg1, %arg0 : i32, i32
  }
  func.func @transform_1(%arg0: i32, %arg1: i32) -> (i32, i32) {
    %c0_i32 = arith.constant 0 : i32
    %c0_i32_0 = arith.constant 0 : i32
    return %c0_i32, %arg0 : i32, i32
  }
  func.func @transform_2(%arg0: i32, %arg1: i32) -> (i32, i32) {
    %c0_i32 = arith.constant 0 : i32
    %c0_i32_0 = arith.constant 0 : i32
    %c0_i32_1 = arith.constant 0 : i32
    return %c0_i32, %c0_i32_0 : i32, i32
  }
  func.func @transform_3(%arg0: i32, %arg1: i32) -> (i32, i32) {
    %c0_i32 = arith.constant 0 : i32
    %c0_i32_0 = arith.constant 0 : i32
    return %c0_i32, %arg0 : i32, i32
  }
}

</mosaic_0001>

<bundles_post_ra>
// kernel: tpu_custom_call.1
= control target key start
LH: loop header
LB: loop body
LE: loop exit
PB: predicated region body
PF: predicated region fallthrough
CT: control target
= control target key end

     0   :  { %9 = vsyncpa [#allocation6], 0  ;;  %s234_s0 = inlined_call_operand.hbm [shape: f32[8,16], index: 0, kind: input, shape index: {}]   ;;  %s235_s1 = inlined_call_operand.vmem [shape: f32[1,16], index: 1, kind: input, shape index: {}]   ;;  %s236_s2 = inlined_call_operand.<no memory space> [shape: f32[1,1], index: 2, kind: input, shape index: {}]   ;;  %s237_s3 = inlined_call_operand.hbm [shape: f32[1,16], index: 3, kind: output, shape index: {}]  }
   0x1   :  { %10 = vsyncpa [#allocation7], 0  ;;  %s16_s14 = sshll.u32 %s234_s0, 4  ;;  %s192_s15 = smov [#allocation5]   ;;  %s17_s14 = int_to_ptr.hbm [resolvable:$true] %s16_s14 }
   0x2   :  { %s18_s16 = sshll.u32 %s192_s15, 4  ;;  %s19_s16 = int_to_ptr.vmem [resolvable:$true] %s18_s16 }
   0x3   :  { %21 = dma.hbm_to_vmem [thread:$0]  %s17_s14, 128, %s19_s16, [#allocation6]  }
   0x4   :  { %188 = dma.done.wait [#allocation6], 128  }
   0x5   :  { %189 = vsyncadd [#allocation6], 4294967168  ;;  %v87_v0 = vstv %s236_s2  ;;  %vm34_vm0 = vcmask 130048   ;;  %v193_v1 = vmov -inf   ;;  %v194_v2 = vmov 0.0   ;;  %v37_v4 = vld [vmem:[#allocation5] sm:$0xff] }
   0x6   :  { %130 = vrcp.f32 %v87_v0  ;;  %35 = vst.msk [vmem:[#allocation2] sm:$0xff] %vm34_vm0, %v193_v1  ;;  %v99_v7 = vand.u32 2147483648, %v87_v0  ;;  %vm93_vm1 = vweird.f32 %v87_v0  ;;  %v97_v10 = vand.u32 2147483647, %v87_v0  ;;  %v82_v49 = vld [vmem:[%s235_s1] sm:$0x1] }
   0x7   :  { %36 = vst.msk [vmem:[#allocation3] sm:$0xff] %vm34_vm0, %v194_v2  ;;  %s195_s20 = smov [#allocation8]   ;;  %s114_s24 = sshll.u32 %s237_s3, 4  ;;  %vm105_vm8 = vcmask 122880   ;;  %s115_s24 = int_to_ptr.hbm [resolvable:$true] %s114_s24 }
   0x8   :  { %v100_v13 = vor.u32 1.1754944e-38, %v99_v7  ;;  %vm98_vm5 = vcmp.eq.f32.partialorder %v97_v10, 8.507059e+37  ;;  %s112_s21 = sshll.u32 %s195_s20, 4  ;;  %s113_s21 = int_to_ptr.vmem [resolvable:$true] %s112_s21 }
   0xc   :  { %v131_v3 = vpop.eup %130 }
   0xd   :  { %v89_v5 = vmul.f32 %v131_v3, %v87_v0  ;;  %v38_v6 = vld [vmem:[#allocation2] sm:$0xff]  ;;  %vm94_vm2 = vweird.f32 %v131_v3 }
   0xe   :  { %v39_v8 = vmax.f32 %v38_v6, %v37_v4  ;;  %vm95_vm4 = vmor %vm93_vm1, %vm94_vm2  ;;  %v48_v24 = vld [vmem:[#allocation3] sm:$0xff] }
   0xf   :  { %v90_v9 = vsub.f32 1.0, %v89_v5 }
  0x10   :  { %vm40_vm3 = vcmp.eq.f32.partialorder %v39_v8, -inf  ;;  %53 = vst.msk [vmem:[#allocation2] sm:$0xff] %vm34_vm0, %v39_v8 }
  0x11   :  { %v91_v11 = vmul.f32 %v131_v3, %v90_v9  ;;  %v41_v12 = vsel %vm40_vm3, 0.0, %v39_v8 }
  0x12   :  { %v42_v14 = vsub.f32 %v38_v6, %v41_v12  ;;  %v45_v15 = vsub.f32 %v37_v4, %v41_v12 }
  0x13   :  { %v92_v16 = vadd.f32 %v131_v3, %v91_v11 }
  0x14   :  { %v43_v17 = vmul.f32 1.442695, %v42_v14  ;;  %v46_v18 = vmul.f32 1.442695, %v45_v15 }
  0x15   :  { %v96_v19 = vsel %vm95_vm4, %v131_v3, %v92_v16 }
  0x16   :  { %v101_v20 = vsel %vm98_vm5, %v100_v13, %v96_v19  ;;  %132 = vpow2.f32 %v43_v17 }
  0x17   :  { %124 = vpush %v101_v20  ;;  %134 = vpow2.f32 %v46_v18  ;;  %v57_v21 = vld [vmem:[#allocation2] sm:$0xff] }
  0x18   :  { %v59_v22 = vsel %vm34_vm0, %v57_v21, -inf }
  0x19   :  { %v60_v23 = vrot.slane %v59_v22, 4 }
  0x1b   :  { %v61_v25 = vmax.f32 %v59_v22, %v60_v23 }
  0x1c   :  { %v133_v26 = vpop.eup %132 }
  0x1d   :  { %v135_v27 = vpop.eup %134  ;;  %v49_v28 = vmul.f32 %v133_v26, %v48_v24  ;;  %v62_v29 = vrot.slane %v61_v25, 2 }
  0x1f   :  { %v50_v30 = vadd.f32 %v135_v27, %v49_v28  ;;  %v63_v31 = vmax.f32 %v61_v25, %v62_v29 }
  0x21   :  { %52 = vst.msk [vmem:[#allocation3] sm:$0xff] %vm34_vm0, %v50_v30  ;;  %v64_v32 = vrot.slane %v63_v31, 1 }
  0x23   :  { %v65_v33 = vmax.f32 %v63_v31, %v64_v32 }
  0x25   :  { %vm66_vm6 = vcmp.eq.f32.partialorder %v65_v33, -inf }
  0x26   :  { %v67_v34 = vsel %vm66_vm6, 0.0, %v65_v33 }
  0x27   :  { %v68_v35 = vsub.f32 %v57_v21, %v67_v34 }
  0x28   :  { %v58_v37 = vld [vmem:[#allocation3] sm:$0xff] }
  0x29   :  { %v69_v36 = vmul.f32 1.442695, %v68_v35 }
  0x2b   :  { %136 = vpow2.f32 %v69_v36 }
  0x31   :  { %v137_v38 = vpop.eup %136 }
  0x32   :  { %v71_v39 = vmul.f32 %v137_v38, %v58_v37 }
  0x34   :  { %v72_v40 = vsel %vm34_vm0, %v71_v39, 0.0 }
  0x35   :  { %v73_v41 = vrot.slane %v72_v40, 4 }
  0x37   :  { %v74_v42 = vadd.f32 %v73_v41, %v72_v40 }
  0x39   :  { %v75_v43 = vrot.slane %v74_v42, 2 }
  0x3b   :  { %v76_v44 = vadd.f32 %v75_v43, %v74_v42 }
  0x3d   :  { %v77_v45 = vrot.slane %v76_v44, 1 }
  0x3f   :  { %v78_v46 = vadd.f32 %v77_v45, %v76_v44 }
  0x41   :  { %138 = vlog2.f32 %v78_v46 }
  0x47   :  { %v139_v47 = vpop.eup %138 }
  0x48   :  { %v80_v48 = vmul.f32 0.6931472, %v139_v47  ;;  %s125_s19 = spop %124 }
  0x49   :  { %v103_v52 = vstv %s125_s19 }
  0x4a   :  { %v81_v50 = vadd.f32 %v80_v48, %v67_v34 }
  0x4c   :  { %v83_v51 = vadd.f32 %v82_v49, %v81_v50 }
  0x4e   :  { %vm84_vm7 = vcmp.ne.f32.partialorder %v83_v51, %v83_v51 }
  0x4f   :  { %v85_v53 = vsel %vm84_vm7, 0.0, %v83_v51 }
  0x50   :  { %v104_v54 = vmul.f32 %v103_v52, %v85_v53 }
  0x52   :  { %106 = vst.msk [vmem:[#allocation8] sm:$0x1] %vm105_vm8, %v104_v54 }
  0x53   :  { %117 = dma.vmem_to_hbm [thread:$0]  %s113_s21, 16, %s115_s24, [#allocation7]  }
  0x54   :  { %190 = dma.done.wait [#allocation7], 16  }
  0x55   :  { %191 = vsyncadd [#allocation7], 4294967280 }
  0x56   :  { %122 = vsyncpa [#allocation6], 1 }
  0x57   :  { %123 = vsyncpa [#allocation7], 1 }

</bundles_post_ra>
